<compile_context>
chip_gen: v7x
topology: tpu7x:2x2x1
jax: 0.10.0
libtpu: 0.0.40
codegen_flags: <defaults>
</compile_context>

<pallas_src>
import functools

import numpy as np
import jax
import jax.numpy as jnp
from jax.experimental import pallas as pl
from jax.experimental.pallas import tpu as pltpu

_LN_EPS = 1e-5    # nn.LayerNorm default eps
_L2_EPS2 = 1e-24  # clamp on sum-of-squares  => l2-norm clamped at ~1e-12


# --------------------------------------------------------------------------
# Kernel
# --------------------------------------------------------------------------

def _fc_layer_kernel(x_ref, w_ref, *refs, use_ln, use_bias, activation, n_valid):
    """One batch tile: (tb, Cin) -> (tb, Cout_padded), fully fused fc_layer."""
    idx = 0
    b_ref = None
    if use_bias:
        b_ref = refs[idx]
        idx += 1
    g_ref = bb_ref = None
    if use_ln:
        g_ref, bb_ref = refs[idx], refs[idx + 1]
        idx += 2
    o_ref = refs[idx]

    # ---- l2_norm over the feature axis (PyTorch dim=1), f32, eps-guarded ----
    x = x_ref[...].astype(jnp.float32)                       # (tb, Cin)
    sq = jnp.sum(x * x, axis=-1, keepdims=True)
    x = x * jax.lax.rsqrt(jnp.maximum(sq, _L2_EPS2))

    # ---- Linear: bf16 MXU operands, f32 accumulation -------------------------
    y = jnp.dot(x.astype(jnp.bfloat16), w_ref[...].astype(jnp.bfloat16),
                preferred_element_type=jnp.float32)           # (tb, Cp) f32
    if use_bias:
        y = y + b_ref[...].astype(jnp.float32)

    # ---- optional LayerNorm: two-pass stats, masked if Cout was padded -------
    if use_ln:
        n_pad = y.shape[-1]
        if n_pad == n_valid:
            mu = jnp.mean(y, axis=-1, keepdims=True)
            d = y - mu
            var = jnp.mean(d * d, axis=-1, keepdims=True)
        else:
            mask = (jax.lax.broadcasted_iota(jnp.int32, (1, n_pad), 1)
                    < n_valid).astype(jnp.float32)
            inv_n = 1.0 / float(n_valid)
            mu = jnp.sum(y * mask, axis=-1, keepdims=True) * inv_n
            d = (y - mu) * mask
            var = jnp.sum(d * d, axis=-1, keepdims=True) * inv_n
        y = (y - mu) * jax.lax.rsqrt(var + _LN_EPS)
        y = y * g_ref[...].astype(jnp.float32) + bb_ref[...].astype(jnp.float32)

    # ---- activation (f32 on the VPU) ------------------------------------------
    if activation == "relu":
        y = jnp.maximum(y, 0.0)
    elif activation == "leakyrelu":
        y = jnp.where(y >= 0.0, y, 0.2 * y)

    o_ref[...] = y.astype(o_ref.dtype)


# --------------------------------------------------------------------------
# Wrapper helpers
# --------------------------------------------------------------------------

def _round_up(n, m):
    return (n + m - 1) // m * m


def _vmem_limit_bytes():
    """Generation-aware scoped-VMEM limit (48 MiB on 64-MiB/TC parts, else 100 MiB)."""
    phys = 128 << 20
    try:
        phys = int(pltpu.get_tpu_info().vmem_capacity_bytes)
    except Exception:
        pass
    return (48 << 20) if phys <= (64 << 20) else (100 << 20)


def _pick_batch_tile(B, cin, cout_p, x_bytes, w_bytes, out_bytes, budget):
    """Largest batch tile (divisor of B, multiple of 8) that fits the VMEM budget."""
    w_resident = cin * cout_p * w_bytes          # single-buffered (Buffered(1))
    params = 4 * cout_p * 4                      # bias/gamma/beta rows
    def fits(tb):
        io = 2 * tb * cin * x_bytes + 2 * tb * cout_p * out_bytes   # double-buffered tiles
        tmp = tb * (6 * cin + 12 * cout_p)                          # in-kernel f32 temporaries
        return w_resident + params + io + tmp <= budget
    for t in (2048, 1024, 512, 256, 128, 64, 32, 16, 8):
        if B % t == 0 and fits(t):
            return t
    return B  # full-dim block is always legal


# --------------------------------------------------------------------------
# Wrapper
# --------------------------------------------------------------------------

def fc_layer(x, w, b=None, gamma=None, beta=None, *,
             bn=False, activation="relu", bias=True, out_dtype=jnp.float32):
    """Pallas implementation of fc_layer.forward.

    x:          (B, in_ch)  f32
    w:          (in_ch, out_ch)  (= nn.Linear.weight.T); pass bf16 to avoid any cast
    b:          (out_ch,)  used only if bias=True
    gamma/beta: (out_ch,)  LayerNorm affine params, used only if bn=True
    """
    B, Cin = x.shape
    Cin_w, Cout = w.shape
    assert Cin == Cin_w, (Cin, Cin_w)

    if bias and b is None:
        b = jnp.zeros((Cout,), jnp.float32)
    if bn and gamma is None:
        gamma = jnp.ones((Cout,), jnp.float32)
    if bn and beta is None:
        beta = jnp.zeros((Cout,), jnp.float32)

    # Lane-dense output: pad out_ch to a multiple of 128 (masked in LN stats,
    # sliced off after the call). Only triggers for small / ragged heads.
    Cp = max(128, _round_up(Cout, 128))
    pad = Cp - Cout
    if pad:
        w = jnp.pad(w, ((0, 0), (0, pad)))
        if bias:
            b = jnp.pad(b, (0, pad))
        if bn:
            gamma = jnp.pad(gamma, (0, pad))
            beta = jnp.pad(beta, (0, pad))

    out_dtype = np.dtype(out_dtype)
    vmem_limit = _vmem_limit_bytes()
    tb = _pick_batch_tile(B, Cin, Cp, x.dtype.itemsize, w.dtype.itemsize,
                          out_dtype.itemsize, vmem_limit)
    grid = (B // tb,)

    kernel = functools.partial(_fc_layer_kernel, use_ln=bn, use_bias=bias,
                               activation=activation, n_valid=Cout)

    bytes_accessed = (x.size * x.dtype.itemsize + w.size * w.dtype.itemsize
                      + B * Cp * out_dtype.itemsize)
    cost = pl.CostEstimate(flops=2 * B * Cin * Cp,
                           transcendentals=2 * B,
                           bytes_accessed=int(bytes_accessed))

    def _run(single_buffer_consts):
        if single_buffer_consts and hasattr(pl, "Buffered"):
            def const_spec(shp):
                return pl.BlockSpec(shp, lambda i: (0, 0),
                                    pipeline_mode=pl.Buffered(1))
        else:
            def const_spec(shp):
                return pl.BlockSpec(shp, lambda i: (0, 0))

        in_specs = [pl.BlockSpec((tb, Cin), lambda i: (i, 0)),   # x tile
                    const_spec((Cin, Cp))]                       # resident weight
        operands = [x, w]
        if bias:
            in_specs.append(const_spec((1, Cp)))
            operands.append(b.reshape(1, Cp))
        if bn:
            in_specs.append(const_spec((1, Cp)))
            in_specs.append(const_spec((1, Cp)))
            operands.append(gamma.reshape(1, Cp))
            operands.append(beta.reshape(1, Cp))

        return pl.pallas_call(
            kernel,
            out_shape=jax.ShapeDtypeStruct((B, Cp), out_dtype),
            grid=grid,
            in_specs=in_specs,
            out_specs=pl.BlockSpec((tb, Cp), lambda i: (i, 0)),
            compiler_params=pltpu.CompilerParams(
                dimension_semantics=("parallel",),   # megacore sharding on v7x
                vmem_limit_bytes=vmem_limit),
            cost_estimate=cost,
        )(*operands)

    try:
        out = _run(True)
    except Exception:
        # Fallback: same kernel without Buffered(1) single-buffering.
        out = _run(False)

    return out[:, :Cout] if pad else out


# --------------------------------------------------------------------------
# Pure-JAX reference (mirrors the PyTorch module, f32 throughout)
# --------------------------------------------------------------------------

def fc_layer_ref(x, w, b, gamma, beta, *, bn, activation, bias):
    nrm = jnp.sqrt(jnp.maximum(jnp.sum(x * x, axis=1, keepdims=True), _L2_EPS2))
    y = (x / nrm) @ w
    if bias:
        y = y + b
    if bn:
        mu = jnp.mean(y, axis=-1, keepdims=True)
        var = jnp.mean((y - mu) ** 2, axis=-1, keepdims=True)
        y = (y - mu) / jnp.sqrt(var + _LN_EPS) * gamma + beta
    if activation == "relu":
        y = jnp.maximum(y, 0.0)
    else:  # leakyrelu
        y = jnp.where(y >= 0.0, y, 0.2 * y)
    return y


# --------------------------------------------------------------------------

if __name__ == "__main__":
    key = jax.random.PRNGKey(0)

    def make_params(k, cin, cout):
        k1, k2, k3, k4 = jax.random.split(k, 4)
        w = jax.random.normal(k1, (cin, cout), jnp.float32) * 0.05
        b = jax.random.normal(k2, (cout,), jnp.float32) * 0.05
        g = 1.0 + 0.1 * jax.random.normal(k3, (cout,), jnp.float32)
        bt = 0.1 * jax.random.normal(k4, (cout,), jnp.float32)
        return w, b, g, bt

    cases = [
        # (B, Cin, Cout, cfg, out_dtype, tol)
        (16, 256, 128, dict(bn=True,  activation="relu",      bias=True),  jnp.float32, 5e-2),
        (16, 256, 128, dict(bn=False, activation="leakyrelu", bias=True),  jnp.float32, 5e-2),
        (16, 256, 128, dict(bn=True,  activation="relu",      bias=False), jnp.float32, 5e-2),
        (16, 256,  96, dict(bn=True,  activation="relu",      bias=True),  jnp.float32, 5e-2),  # padded-Cout path
        (16, 256, 128, dict(bn=False, activation="relu",      bias=True),  jnp.bfloat16, 1e-1),  # bf16 output
    ]

    for B, Cin, Cout, cfg, odt, tol in cases:
        key, kx, kp = jax.random.split(key, 3)
        x = jax.random.normal(kx, (B, Cin), jnp.float32)
        w, b, g, bt = make_params(kp, Cin, Cout)
        w_bf16 = w.astype(jnp.bfloat16)   # pre-cast ONCE; no per-call wrapper cast

        out = jax.block_until_ready(
            fc_layer(x, w_bf16, b, g, bt, out_dtype=odt, **cfg))
        ref = fc_layer_ref(x, w, b, g, bt, **cfg)

        assert out.shape == (B, Cout), (out.shape, cfg)
        out_f32 = out.astype(jnp.float32)
        assert bool(jnp.all(jnp.isfinite(out_f32))), cfg
        err = float(jnp.max(jnp.abs(out_f32 - ref)))
        assert err < tol, (err, B, Cin, Cout, cfg, odt)

    print("KERNEL_OK")
</pallas_src>

<mosaic_0001>
module attributes {stable_mosaic.version = 11 : i64} {
  func.func @_fc_layer_kernel(%arg0: i32, %arg1: memref<16x256xf32, #tpu.memory_space<vmem>>, %arg2: memref<256x128xbf16, #tpu.memory_space<vmem>>, %arg3: memref<1x128xf32, #tpu.memory_space<vmem>>, %arg4: memref<1x128xf32, #tpu.memory_space<vmem>>, %arg5: memref<1x128xf32, #tpu.memory_space<vmem>>, %arg6: memref<16x128xf32, #tpu.memory_space<vmem>>) attributes {dimension_semantics = [#tpu.dimension_semantics<parallel>], iteration_bounds = array<i64: 1>, scalar_prefetch = 0 : i64, scratch_operands = 0 : i64, tpu.core_type = #tpu.core_type<tc>, window_params = [{transform_indices = @transform_0, window_bounds = array<i64: 16, 256>}, {pipeline_mode = #tpu.pipeline_mode<synchronous>, transform_indices = @transform_1, window_bounds = array<i64: 256, 128>}, {pipeline_mode = #tpu.pipeline_mode<synchronous>, transform_indices = @transform_2, window_bounds = array<i64: 1, 128>}, {pipeline_mode = #tpu.pipeline_mode<synchronous>, transform_indices = @transform_3, window_bounds = array<i64: 1, 128>}, {pipeline_mode = #tpu.pipeline_mode<synchronous>, transform_indices = @transform_4, window_bounds = array<i64: 1, 128>}, {transform_indices = @transform_5, window_bounds = array<i64: 16, 128>}]} {
    %c0 = arith.constant 0 : index
    %c0_0 = arith.constant 0 : index
    %0 = vector.load %arg1[%c0, %c0_0] : memref<16x256xf32, #tpu.memory_space<vmem>>, vector<16x256xf32>
    %1 = arith.mulf %0, %0 : vector<16x256xf32>
    %cst = arith.constant dense<0.000000e+00> : vector<16xf32>
    %2 = vector.multi_reduction <add>, %1, %cst [1] : vector<16x256xf32> to vector<16xf32>
    %3 = vector.shape_cast %2 : vector<16xf32> to vector<16x1xf32>
    %cst_1 = arith.constant 1.000000e-24 : f32
    %4 = vector.broadcast %cst_1 : f32 to vector<16x1xf32>
    %5 = arith.maximumf %3, %4 : vector<16x1xf32>
    %6 = math.rsqrt %5 : vector<16x1xf32>
    %7 = vector.broadcast %6 : vector<16x1xf32> to vector<16x256xf32>
    %8 = arith.mulf %0, %7 : vector<16x256xf32>
    %9 = arith.truncf %8 : vector<16x256xf32> to vector<16x256xbf16>
    %c0_2 = arith.constant 0 : index
    %c0_3 = arith.constant 0 : index
    %10 = vector.load %arg2[%c0_2, %c0_3] : memref<256x128xbf16, #tpu.memory_space<vmem>>, vector<256x128xbf16>
    %cst_4 = arith.constant dense<0.000000e+00> : vector<16x128xf32>
    %11 = tpu.matmul %9, %10, %cst_4 {dimension_numbers = #tpu.dot_dimension_numbers<[1], [0], [0], [1], [0, 0, 1, 1], [], []>} : vector<16x256xbf16>, vector<256x128xbf16>, vector<16x128xf32> -> vector<16x128xf32>
    %c0_5 = arith.constant 0 : index
    %c0_6 = arith.constant 0 : index
    %12 = vector.load %arg3[%c0_5, %c0_6] : memref<1x128xf32, #tpu.memory_space<vmem>>, vector<1x128xf32>
    %13 = vector.broadcast %12 : vector<1x128xf32> to vector<16x128xf32>
    %14 = arith.addf %11, %13 : vector<16x128xf32>
    %cst_7 = arith.constant dense<0.000000e+00> : vector<16xf32>
    %15 = vector.multi_reduction <add>, %14, %cst_7 [1] : vector<16x128xf32> to vector<16xf32>
    %16 = vector.shape_cast %15 : vector<16xf32> to vector<16x1xf32>
    %cst_8 = arith.constant 1.280000e+02 : f32
    %17 = vector.broadcast %cst_8 : f32 to vector<16x1xf32>
    %18 = arith.divf %16, %17 : vector<16x1xf32>
    %19 = vector.broadcast %18 : vector<16x1xf32> to vector<16x128xf32>
    %20 = arith.subf %14, %19 : vector<16x128xf32>
    %21 = arith.mulf %20, %20 : vector<16x128xf32>
    %cst_9 = arith.constant dense<0.000000e+00> : vector<16xf32>
    %22 = vector.multi_reduction <add>, %21, %cst_9 [1] : vector<16x128xf32> to vector<16xf32>
    %23 = vector.shape_cast %22 : vector<16xf32> to vector<16x1xf32>
    %cst_10 = arith.constant 1.280000e+02 : f32
    %24 = vector.broadcast %cst_10 : f32 to vector<16x1xf32>
    %25 = arith.divf %23, %24 : vector<16x1xf32>
    %26 = vector.broadcast %18 : vector<16x1xf32> to vector<16x128xf32>
    %27 = arith.subf %14, %26 : vector<16x128xf32>
    %cst_11 = arith.constant 9.99999974E-6 : f32
    %28 = vector.broadcast %cst_11 : f32 to vector<16x1xf32>
    %29 = arith.addf %25, %28 : vector<16x1xf32>
    %30 = math.rsqrt %29 : vector<16x1xf32>
    %31 = vector.broadcast %30 : vector<16x1xf32> to vector<16x128xf32>
    %32 = arith.mulf %27, %31 : vector<16x128xf32>
    %c0_12 = arith.constant 0 : index
    %c0_13 = arith.constant 0 : index
    %33 = vector.load %arg4[%c0_12, %c0_13] : memref<1x128xf32, #tpu.memory_space<vmem>>, vector<1x128xf32>
    %34 = vector.broadcast %33 : vector<1x128xf32> to vector<16x128xf32>
    %35 = arith.mulf %32, %34 : vector<16x128xf32>
    %c0_14 = arith.constant 0 : index
    %c0_15 = arith.constant 0 : index
    %36 = vector.load %arg5[%c0_14, %c0_15] : memref<1x128xf32, #tpu.memory_space<vmem>>, vector<1x128xf32>
    %37 = vector.broadcast %36 : vector<1x128xf32> to vector<16x128xf32>
    %38 = arith.addf %35, %37 : vector<16x128xf32>
    %cst_16 = arith.constant 0.000000e+00 : f32
    %39 = vector.broadcast %cst_16 : f32 to vector<16x128xf32>
    %40 = arith.maximumf %38, %39 : vector<16x128xf32>
    %c0_17 = arith.constant 0 : index
    %c0_18 = arith.constant 0 : index
    %41 = vector.load %arg6[%c0_17, %c0_18] : memref<16x128xf32, #tpu.memory_space<vmem>>, vector<16x128xf32>
    tpu.vector_store %arg6[%c0_17, %c0_18], %40 {strides = array<i32>} : memref<16x128xf32, #tpu.memory_space<vmem>>, vector<16x128xf32>,
    return
  }
  func.func @transform_0(%arg0: i32) -> (i32, i32) {
    %c0_i32 = arith.constant 0 : i32
    %c0_i32_0 = arith.constant 0 : i32
    return %arg0, %c0_i32 : i32, i32
  }
  func.func @transform_1(%arg0: i32) -> (i32, i32) {
    %c0_i32 = arith.constant 0 : i32
    %c0_i32_0 = arith.constant 0 : i32
    %c0_i32_1 = arith.constant 0 : i32
    return %c0_i32, %c0_i32_0 : i32, i32
  }
  func.func @transform_2(%arg0: i32) -> (i32, i32) {
    %c0_i32 = arith.constant 0 : i32
    %c0_i32_0 = arith.constant 0 : i32
    %c0_i32_1 = arith.constant 0 : i32
    return %c0_i32, %c0_i32_0 : i32, i32
  }
  func.func @transform_3(%arg0: i32) -> (i32, i32) {
    %c0_i32 = arith.constant 0 : i32
    %c0_i32_0 = arith.constant 0 : i32
    %c0_i32_1 = arith.constant 0 : i32
    return %c0_i32, %c0_i32_0 : i32, i32
  }
  func.func @transform_4(%arg0: i32) -> (i32, i32) {
    %c0_i32 = arith.constant 0 : i32
    %c0_i32_0 = arith.constant 0 : i32
    %c0_i32_1 = arith.constant 0 : i32
    return %c0_i32, %c0_i32_0 : i32, i32
  }
  func.func @transform_5(%arg0: i32) -> (i32, i32) {
    %c0_i32 = arith.constant 0 : i32
    %c0_i32_0 = arith.constant 0 : i32
    return %arg0, %c0_i32 : i32, i32
  }
}

module attributes {stable_mosaic.version = 11 : i64} {
  func.func @_fc_layer_kernel(%arg0: i32, %arg1: memref<16x256xf32, #tpu.memory_space<vmem>>, %arg2: memref<256x128xbf16, #tpu.memory_space<vmem>>, %arg3: memref<1x128xf32, #tpu.memory_space<vmem>>, %arg4: memref<1x128xf32, #tpu.memory_space<vmem>>, %arg5: memref<1x128xf32, #tpu.memory_space<vmem>>, %arg6: memref<16x128xf32, #tpu.memory_space<vmem>>) attributes {dimension_semantics = [#tpu.dimension_semantics<parallel>], iteration_bounds = array<i64: 1>, scalar_prefetch = 0 : i64, scratch_operands = 0 : i64, tpu.core_type = #tpu.core_type<tc>, window_params = [{transform_indices = @transform_0, window_bounds = array<i64: 16, 256>}, {pipeline_mode = #tpu.pipeline_mode<synchronous>, transform_indices = @transform_1, window_bounds = array<i64: 256, 128>}, {pipeline_mode = #tpu.pipeline_mode<synchronous>, transform_indices = @transform_2, window_bounds = array<i64: 1, 128>}, {pipeline_mode = #tpu.pipeline_mode<synchronous>, transform_indices = @transform_3, window_bounds = array<i64: 1, 128>}, {pipeline_mode = #tpu.pipeline_mode<synchronous>, transform_indices = @transform_4, window_bounds = array<i64: 1, 128>}, {transform_indices = @transform_5, window_bounds = array<i64: 16, 128>}]} {
    %c0 = arith.constant 0 : index
    %c0_0 = arith.constant 0 : index
    %0 = vector.load %arg1[%c0, %c0_0] : memref<16x256xf32, #tpu.memory_space<vmem>>, vector<16x256xf32>
    %1 = arith.mulf %0, %0 : vector<16x256xf32>
    %cst = arith.constant dense<0.000000e+00> : vector<16xf32>
    %2 = vector.multi_reduction <add>, %1, %cst [1] : vector<16x256xf32> to vector<16xf32>
    %3 = vector.shape_cast %2 : vector<16xf32> to vector<16x1xf32>
    %cst_1 = arith.constant 1.000000e-24 : f32
    %4 = vector.broadcast %cst_1 : f32 to vector<16x1xf32>
    %5 = arith.maximumf %3, %4 : vector<16x1xf32>
    %6 = math.rsqrt %5 : vector<16x1xf32>
    %7 = vector.broadcast %6 : vector<16x1xf32> to vector<16x256xf32>
    %8 = arith.mulf %0, %7 : vector<16x256xf32>
    %9 = arith.truncf %8 : vector<16x256xf32> to vector<16x256xbf16>
    %c0_2 = arith.constant 0 : index
    %c0_3 = arith.constant 0 : index
    %10 = vector.load %arg2[%c0_2, %c0_3] : memref<256x128xbf16, #tpu.memory_space<vmem>>, vector<256x128xbf16>
    %cst_4 = arith.constant dense<0.000000e+00> : vector<16x128xf32>
    %11 = tpu.matmul %9, %10, %cst_4 {dimension_numbers = #tpu.dot_dimension_numbers<[1], [0], [0], [1], [0, 0, 1, 1], [], []>} : vector<16x256xbf16>, vector<256x128xbf16>, vector<16x128xf32> -> vector<16x128xf32>
    %c0_5 = arith.constant 0 : index
    %c0_6 = arith.constant 0 : index
    %12 = vector.load %arg3[%c0_5, %c0_6] : memref<1x128xf32, #tpu.memory_space<vmem>>, vector<1x128xf32>
    %13 = vector.broadcast %12 : vector<1x128xf32> to vector<16x128xf32>
    %14 = arith.addf %11, %13 : vector<16x128xf32>
    %cst_7 = arith.constant dense<0.000000e+00> : vector<16xf32>
    %15 = vector.multi_reduction <add>, %14, %cst_7 [1] : vector<16x128xf32> to vector<16xf32>
    %16 = vector.shape_cast %15 : vector<16xf32> to vector<16x1xf32>
    %cst_8 = arith.constant 1.280000e+02 : f32
    %17 = vector.broadcast %cst_8 : f32 to vector<16x1xf32>
    %18 = arith.divf %16, %17 : vector<16x1xf32>
    %19 = vector.broadcast %18 : vector<16x1xf32> to vector<16x128xf32>
    %20 = arith.subf %14, %19 : vector<16x128xf32>
    %21 = arith.mulf %20, %20 : vector<16x128xf32>
    %cst_9 = arith.constant dense<0.000000e+00> : vector<16xf32>
    %22 = vector.multi_reduction <add>, %21, %cst_9 [1] : vector<16x128xf32> to vector<16xf32>
    %23 = vector.shape_cast %22 : vector<16xf32> to vector<16x1xf32>
    %cst_10 = arith.constant 1.280000e+02 : f32
    %24 = vector.broadcast %cst_10 : f32 to vector<16x1xf32>
    %25 = arith.divf %23, %24 : vector<16x1xf32>
    %26 = vector.broadcast %18 : vector<16x1xf32> to vector<16x128xf32>
    %27 = arith.subf %14, %26 : vector<16x128xf32>
    %cst_11 = arith.constant 9.99999974E-6 : f32
    %28 = vector.broadcast %cst_11 : f32 to vector<16x1xf32>
    %29 = arith.addf %25, %28 : vector<16x1xf32>
    %30 = math.rsqrt %29 : vector<16x1xf32>
    %31 = vector.broadcast %30 : vector<16x1xf32> to vector<16x128xf32>
    %32 = arith.mulf %27, %31 : vector<16x128xf32>
    %c0_12 = arith.constant 0 : index
    %c0_13 = arith.constant 0 : index
    %33 = vector.load %arg4[%c0_12, %c0_13] : memref<1x128xf32, #tpu.memory_space<vmem>>, vector<1x128xf32>
    %34 = vector.broadcast %33 : vector<1x128xf32> to vector<16x128xf32>
    %35 = arith.mulf %32, %34 : vector<16x128xf32>
    %c0_14 = arith.constant 0 : index
    %c0_15 = arith.constant 0 : index
    %36 = vector.load %arg5[%c0_14, %c0_15] : memref<1x128xf32, #tpu.memory_space<vmem>>, vector<1x128xf32>
    %37 = vector.broadcast %36 : vector<1x128xf32> to vector<16x128xf32>
    %38 = arith.addf %35, %37 : vector<16x128xf32>
    %cst_16 = arith.constant 0.000000e+00 : f32
    %39 = vector.broadcast %cst_16 : f32 to vector<16x128xf32>
    %40 = arith.maximumf %38, %39 : vector<16x128xf32>
    %c0_17 = arith.constant 0 : index
    %c0_18 = arith.constant 0 : index
    %41 = vector.load %arg6[%c0_17, %c0_18] : memref<16x128xf32, #tpu.memory_space<vmem>>, vector<16x128xf32>
    tpu.vector_store %arg6[%c0_17, %c0_18], %40 {strides = array<i32>} : memref<16x128xf32, #tpu.memory_space<vmem>>, vector<16x128xf32>,
    return
  }
  func.func @transform_0(%arg0: i32) -> (i32, i32) {
    %c0_i32 = arith.constant 0 : i32
    %c0_i32_0 = arith.constant 0 : i32
    return %arg0, %c0_i32 : i32, i32
  }
  func.func @transform_1(%arg0: i32) -> (i32, i32) {
    %c0_i32 = arith.constant 0 : i32
    %c0_i32_0 = arith.constant 0 : i32
    %c0_i32_1 = arith.constant 0 : i32
    return %c0_i32, %c0_i32_0 : i32, i32
  }
  func.func @transform_2(%arg0: i32) -> (i32, i32) {
    %c0_i32 = arith.constant 0 : i32
    %c0_i32_0 = arith.constant 0 : i32
    %c0_i32_1 = arith.constant 0 : i32
    return %c0_i32, %c0_i32_0 : i32, i32
  }
  func.func @transform_3(%arg0: i32) -> (i32, i32) {
    %c0_i32 = arith.constant 0 : i32
    %c0_i32_0 = arith.constant 0 : i32
    %c0_i32_1 = arith.constant 0 : i32
    return %c0_i32, %c0_i32_0 : i32, i32
  }
  func.func @transform_4(%arg0: i32) -> (i32, i32) {
    %c0_i32 = arith.constant 0 : i32
    %c0_i32_0 = arith.constant 0 : i32
    %c0_i32_1 = arith.constant 0 : i32
    return %c0_i32, %c0_i32_0 : i32, i32
  }
  func.func @transform_5(%arg0: i32) -> (i32, i32) {
    %c0_i32 = arith.constant 0 : i32
    %c0_i32_0 = arith.constant 0 : i32
    return %arg0, %c0_i32 : i32, i32
  }
}

</mosaic_0001>

<bundles_post_ra>
// kernel: tpu_custom_call.1
= control target key start
LH: loop header
LB: loop body
LE: loop exit
PB: predicated region body
PF: predicated region fallthrough
CT: control target
= control target key end

     0   :  { %10 = vsyncpa [#allocation3], 0  ;;  %s679_s0 = inlined_call_operand.hbm [shape: f32[16,256], index: 0, kind: input, shape index: {}]   ;;  %s680_s1 = inlined_call_operand.hbm [shape: bf16[256,128], index: 1, kind: input, shape index: {}]   ;;  %s681_s2 = inlined_call_operand.hbm [shape: f32[1,128], index: 2, kind: input, shape index: {}]   ;;  %s682_s3 = inlined_call_operand.hbm [shape: f32[1,128], index: 3, kind: input, shape index: {}]   ;;  %s683_s4 = inlined_call_operand.hbm [shape: f32[1,128], index: 4, kind: input, shape index: {}]   ;;  %s684_s5 = inlined_call_operand.hbm [shape: f32[16,128], index: 5, kind: output, shape index: {}]  }
   0x1   :  { %11 = vsyncpa [#allocation6], 0 }
   0x2   :  { %12 = vsyncpa [#allocation9], 0 }
   0x3   :  { %13 = vsyncpa [#allocation4], 0  ;;  %s565_s18 = smov [#allocation5]   ;;  %s425_s22 = scalar_lea.hbm %s680_s1, 2048 }
   0x4   :  { %s31_s19 = sshll.u32 %s565_s18, 4  ;;  %p426_p0 = scmp.ne.s32.totalorder %s680_s1, %s425_s22  ;;  %s32_s19 = int_to_ptr.vmem [resolvable:$true] %s31_s19 }
   0x5   :  { %p429_p1 = scmp.lt.u32.totalorder %s425_s22, %s680_s1 }
   0x7   :  { %p431_p2 = pnand %p429_p1, %p426_p0 }
   0x9   :  { %434 = shalt.err (!%p431_p2)
}
   0xa   :  { %s435_s27 = scalar_lea.vmem %s32_s19, 2048  ;;  %p440_p4 = scmp.lt.s32.totalorder %s32_s19, %s32_s19 }
   0xb   :  { %p436_p3 = scmp.ne.s32.totalorder %s32_s19, %s435_s27  ;;  %p441_p5 = scmp.lt.s32.totalorder %s435_s27, %s435_s27 }
   0xd   :  { %p442_p6 = por %p441_p5, %p440_p4 }
   0xf   :  { %p443_p7 = pnand %p442_p6, %p436_p3 }
  0x11   :  { %446 = shalt.err (!%p443_p7)
}
  0x12   :  { %s566_s28 = smov 64   ;;  %s567_s29 = smov 4  }
  0x13   :  { %37 = dma.hbm_to_vmem [thread:$0]  %s680_s1, 2048, %s32_s19, [#allocation6], %s566_s28, %s566_s28, %s567_s29  }
  0x14   :  { %s568_s7 = smov [#allocation8]   ;;  %s569_s9 = smov [#allocation2]  }
  0x15   :  { %s54_s8 = sshll.u32 %s568_s7, 4  ;;  %s19_s10 = sshll.u32 %s569_s9, 4  ;;  %s55_s8 = int_to_ptr.vmem [resolvable:$true] %s54_s8  ;;  %s20_s10 = int_to_ptr.vmem [resolvable:$true] %s19_s10 }
  0x16   :  { %s447_s13 = scalar_lea.hbm %s682_s3, 16 }
  0x17   :  { %p448_p8 = scmp.ne.s32.totalorder %s682_s3, %s447_s13  ;;  %p451_p9 = scmp.lt.u32.totalorder %s447_s13, %s682_s3 }
  0x19   :  { %p453_p10 = pnand %p451_p9, %p448_p8 }
  0x1b   :  { %456 = shalt.err (!%p453_p10)
}
  0x1c   :  { %s457_s1 = scalar_lea.vmem %s55_s8, 16  ;;  %s461_s18 = scalar_lea.vmem %s55_s8, 32 }
  0x1d   :  { %p458_p11 = scmp.ne.s32.totalorder %s55_s8, %s457_s1  ;;  %p462_p12 = scmp.lt.s32.totalorder %s55_s8, %s55_s8 }
  0x1e   :  { %p463_p13 = scmp.lt.s32.totalorder %s461_s18, %s457_s1 }
  0x20   :  { %p464_p0 = por %p463_p13, %p462_p12 }
  0x22   :  { %p465_p1 = pnand %p464_p0, %p458_p11 }
  0x24   :  { %468 = shalt.err (!%p465_p1)
}
  0x25   :  { %57 = dma.hbm_to_vmem [thread:$0]  %s682_s3, 16, %s55_s8, [#allocation9]  }
  0x26   :  { %s469_s23 = scalar_lea.hbm %s679_s0, 512 }
  0x27   :  { %p470_p2 = scmp.ne.s32.totalorder %s679_s0, %s469_s23  ;;  %p473_p3 = scmp.lt.u32.totalorder %s469_s23, %s679_s0 }
  0x29   :  { %p475_p4 = pnand %p473_p3, %p470_p2 }
  0x2b   :  { %478 = shalt.err (!%p475_p4)
}
  0x2c   :  { %s479_s28 = scalar_lea.vmem %s20_s10, 512  ;;  %p484_p6 = scmp.lt.s32.totalorder %s20_s10, %s20_s10 }
  0x2d   :  { %p480_p5 = scmp.ne.s32.totalorder %s20_s10, %s479_s28  ;;  %p485_p7 = scmp.lt.s32.totalorder %s479_s28, %s479_s28 }
  0x2f   :  { %p486_p8 = por %p485_p7, %p484_p6 }
  0x31   :  { %p487_p9 = pnand %p486_p8, %p480_p5 }
  0x33   :  { %490 = shalt.err (!%p487_p9)
}
  0x34   :  { %s570_s3 = smov 256   ;;  %s571_s29 = smov 16  }
  0x35   :  { %25 = dma.hbm_to_vmem [thread:$0]  %s679_s0, 512, %s20_s10, [#allocation3], %s570_s3, %s570_s3, %s571_s29  }
  0x36   :  { %s572_s7 = smov [#allocation7]   ;;  %s573_s9 = smov [#allocation10]  }
  0x37   :  { %s44_s8 = sshll.u32 %s572_s7, 4  ;;  %s64_s11 = sshll.u32 %s573_s9, 4  ;;  %s45_s8 = int_to_ptr.vmem [resolvable:$true] %s44_s8  ;;  %s65_s11 = int_to_ptr.vmem [resolvable:$true] %s64_s11 }
  0x38   :  { %s491_s14 = scalar_lea.hbm %s681_s2, 16 }
  0x39   :  { %p492_p10 = scmp.ne.s32.totalorder %s681_s2, %s491_s14  ;;  %p495_p11 = scmp.lt.u32.totalorder %s491_s14, %s681_s2 }
  0x3b   :  { %p497_p12 = pnand %p495_p11, %p492_p10 }
  0x3d   :  { %500 = shalt.err (!%p497_p12)
}
  0x3e   :  { %s501_s0 = scalar_lea.vmem %s45_s8, 16  ;;  %s505_s10 = scalar_lea.vmem %s45_s8, 32 }
  0x3f   :  { %p502_p13 = scmp.ne.s32.totalorder %s45_s8, %s501_s0  ;;  %p506_p0 = scmp.lt.s32.totalorder %s45_s8, %s45_s8 }
  0x40   :  { %p507_p1 = scmp.lt.s32.totalorder %s505_s10, %s501_s0 }
  0x42   :  { %p508_p2 = por %p507_p1, %p506_p0 }
  0x44   :  { %p509_p3 = pnand %p508_p2, %p502_p13 }
  0x46   :  { %512 = shalt.err (!%p509_p3)
}
  0x47   :  { %47 = dma.hbm_to_vmem [thread:$0]  %s681_s2, 16, %s45_s8, [#allocation6]  }
  0x48   :  { %s513_s22 = scalar_lea.hbm %s683_s4, 16 }
  0x49   :  { %p514_p4 = scmp.ne.s32.totalorder %s683_s4, %s513_s22  ;;  %p517_p5 = scmp.lt.u32.totalorder %s513_s22, %s683_s4 }
  0x4b   :  { %p519_p6 = pnand %p517_p5, %p514_p4 }
  0x4d   :  { %522 = shalt.err (!%p519_p6)
}
  0x4e   :  { %s523_s27 = scalar_lea.vmem %s65_s11, 16  ;;  %s527_s28 = scalar_lea.vmem %s65_s11, 32 }
  0x4f   :  { %p524_p7 = scmp.ne.s32.totalorder %s65_s11, %s523_s27  ;;  %p528_p8 = scmp.lt.s32.totalorder %s65_s11, %s65_s11 }
  0x50   :  { %p529_p9 = scmp.lt.s32.totalorder %s527_s28, %s523_s27 }
  0x52   :  { %p530_p10 = por %p529_p9, %p528_p8 }
  0x54   :  { %p531_p11 = pnand %p530_p10, %p524_p7 }
  0x56   :  { %534 = shalt.err (!%p531_p11)
}
  0x57   :  { %67 = dma.hbm_to_vmem [thread:$0]  %s683_s4, 16, %s65_s11, [#allocation9]  }
  0x58   :  { %557 = dma.done.wait [#allocation3], 512  }
  0x59   :  { %558 = vsyncadd [#allocation3], 4294966784 }
  0x5a   :  { %559 = dma.done.wait [#allocation6], 2064  }
  0x5b   :  { %560 = vsyncadd [#allocation6], 4294965232 }
  0x5c   :  { %561 = dma.done.wait [#allocation9], 32  }
  0x5d   :  { %562 = vsyncadd [#allocation9], 4294967264  ;;  %v84_v0 = vld [vmem:[#allocation2] sm:$0xff]  ;;  %v85_v1 = vld [vmem:[#allocation2 + $0x8] sm:$0xff]  ;;  %s574_s4 = smov [#allocation11]  }
  0x5e   :  { %v86_v2 = vld [vmem:[#allocation2 + $0x10] sm:$0xff]  ;;  %v88_v3 = vmul.f32 %v84_v0, %v84_v0  ;;  %v89_v4 = vmul.f32 %v85_v1, %v85_v1  ;;  %v87_v5 = vld [vmem:[#allocation2 + $0x18] sm:$0xff]  ;;  %v401_v8 = vld [vmem:[#allocation5 + $0x40] sm:$0xff]   ;;  %s334_s29 = sshll.u32 %s574_s4, 4  ;;  %s335_s29 = int_to_ptr.vmem [resolvable:$true] %s334_s29 }
  0x5f   :  { %v90_v6 = vmul.f32 %v86_v2, %v86_v2  ;;  %v91_v7 = vmul.f32 %v87_v5, %v87_v5  ;;  %v402_v10 = vld [vmem:[#allocation5] sm:$0xff]   ;;  %367 = vmatprep.subr.bf16.mxu0 %v401_v8  ;;  %v403_v11 = vld [vmem:[#allocation5 + $0x48] sm:$0xff]   ;;  %v405_v14 = vld [vmem:[#allocation5 + $0x50] sm:$0xff]   ;;  %s535_s30 = scalar_lea.vmem %s335_s29, 256  ;;  %p540_p13 = scmp.lt.s32.totalorder %s335_s29, %s335_s29 }
  0x60   :  { %v92_v9 = vadd.f32 %v89_v4, %v88_v3  ;;  %368 = vmatpush3.bf16.msra.mxu0 %v402_v10  ;;  %v404_v13 = vld [vmem:[#allocation5 + $0x8] sm:$0xff]   ;;  %v406_v15 = vld [vmem:[#allocation5 + $0x10] sm:$0xff]   ;;  %v407_v16 = vld [vmem:[#allocation5 + $0x58] sm:$0xff]   ;;  %p536_p12 = scmp.ne.s32.totalorder %s335_s29, %s535_s30  ;;  %p541_p0 = scmp.lt.s32.totalorder %s535_s30, %s535_s30 }
  0x61   :  { %v95_v12 = vadd.f32 %v91_v7, %v90_v6  ;;  %369 = vmatprep.subr.bf16.mxu0 %v403_v11  ;;  %v408_v17 = vld [vmem:[#allocation5 + $0x18] sm:$0xff]   ;;  %v409_v18 = vld [vmem:[#allocation5 + $0x60] sm:$0xff]   ;;  %v411_v20 = vld [vmem:[#allocation5 + $0x68] sm:$0xff]  }
  0x62   :  { %93 = vadd.xlane.f32.xlu0 %v92_v9  ;;  %v410_v19 = vld [vmem:[#allocation5 + $0x20] sm:$0xff]   ;;  %v412_v21 = vld [vmem:[#allocation5 + $0x28] sm:$0xff]   ;;  %v413_v22 = vld [vmem:[#allocation5 + $0x70] sm:$0xff]   ;;  %p542_p1 = por %p541_p0, %p540_p13 }
  0x63   :  { %v414_v23 = vld [vmem:[#allocation5 + $0x30] sm:$0xff]   ;;  %v415_v24 = vld [vmem:[#allocation5 + $0x78] sm:$0xff]   ;;  %v348_v40 = vld [vmem:[#allocation7] ss:$0 sm:$0xff] }
  0x64   :  { %370 = vmatpush3.bf16.msra.mxu0 %v404_v13  ;;  %v416_v25 = vld [vmem:[#allocation5 + $0x38] sm:$0xff]   ;;  %v365_v62 = vld [vmem:[#allocation8] ss:$0 sm:$0xff]  ;;  %p543_p2 = pnand %p542_p1, %p536_p12 }
  0x65   :  { %371 = vmatprep.subr.bf16.mxu0 %v405_v14 }
  0x66   :  { %96 = vadd.xlane.f32.xlu0 %v95_v12 }
  0x68   :  { %372 = vmatpush3.bf16.msra.mxu0 %v406_v15 }
  0x69   :  { %373 = vmatprep.subr.bf16.mxu0 %v407_v16 }
  0x6c   :  { %374 = vmatpush3.bf16.msra.mxu0 %v408_v17 }
  0x6d   :  { %375 = vmatprep.subr.bf16.mxu0 %v409_v18 }
  0x70   :  { %376 = vmatpush3.bf16.msra.mxu0 %v410_v19 }
  0x71   :  { %377 = vmatprep.subr.bf16.mxu0 %v411_v20 }
  0x74   :  { %378 = vmatpush3.bf16.msra.mxu0 %v412_v21 }
  0x75   :  { %379 = vmatprep.subr.bf16.mxu0 %v413_v22 }
  0x78   :  { %380 = vmatpush3.bf16.msra.mxu0 %v414_v23 }
  0x79   :  { %381 = vmatprep.subr.bf16.mxu0 %v415_v24 }
  0x7c   :  { %382 = vmatpush3.bf16.msra.mxu0 %v416_v25 }
  0xef   :  { %v94_v26 = vpop.xlane.xlu0 %93 }
  0xf0   :  { %v98_v27 = vmax.f32 %v94_v26, 1e-24 }
  0xf2   :  { %417 = vrsqrt.f32 %v98_v27 }
  0xf3   :  { %v97_v28 = vpop.xlane.xlu0 %96 }
  0xf4   :  { %v99_v29 = vmax.f32 %v97_v28, 1e-24 }
  0xf6   :  { %419 = vrsqrt.f32 %v99_v29 }
  0xfc   :  { %v418_v30 = vpop.eup %417 }
  0xfd   :  { %v103_v32 = vmul.f32 %v418_v30, %v85_v1  ;;  %v102_v34 = vmul.f32 %v418_v30, %v84_v0  ;;  %v366_v0 = vld [vmem:[#allocation10] ss:$0 sm:$0xff] }
 0x100   :  { %v420_v31 = vpop.eup %419 }
 0x101   :  { %v105_v33 = vmul.f32 %v420_v31, %v87_v5  ;;  %v104_v35 = vmul.f32 %v420_v31, %v86_v2 }
 0x103   :  { %v107_v36 = vpack.c.bf16 %v105_v33, %v103_v32  ;;  %v106_v37 = vpack.c.bf16 %v104_v35, %v102_v34 }
 0x105   :  { %275 = vmatprep.mubr.bf16.mxu0 %v107_v36 }
 0x106   :  { %276 = vmatmul.mubr.bf16.vlgmr.msra.gmra.mrb[0].mxu0 %v106_v37 }
 0x1d9   :  { %v383_v38 = vpop.f32.mrb[0].mxu0 }
 0x1da   :  { %v384_v39 = vpop.f32.mrb[1].mxu0 }
 0x1db   :  { %v385_v41 = vadd.f32 %v384_v39, %v383_v38  ;;  %v386_v42 = vpop.f32.mrb[2].mxu0 }
 0x1dc   :  { %v387_v43 = vpop.f32.mrb[3].mxu0 }
 0x1dd   :  { %v388_v44 = vadd.f32 %v387_v43, %v386_v42  ;;  %v278_v45 = vadd.f32 %v385_v41, %v348_v40 }
 0x1df   :  { %284 = vadd.xlane.f32.xlu1 %v278_v45  ;;  %v281_v46 = vadd.f32 %v388_v44, %v348_v40 }
 0x1e3   :  { %286 = vadd.xlane.f32.xlu1 %v281_v46 }
 0x26c   :  { %v285_v47 = vpop.xlane.xlu1 %284 }
 0x26d   :  { %v289_v48 = vmul.f32 0.0078125, %v285_v47 }
 0x26f   :  { %v291_v49 = vsub.f32 %v278_v45, %v289_v48 }
 0x270   :  { %v287_v50 = vpop.xlane.xlu1 %286 }
 0x271   :  { %v290_v51 = vmul.f32 0.0078125, %v287_v50  ;;  %v293_v52 = vmul.f32 %v291_v49, %v291_v49 }
 0x273   :  { %v292_v53 = vsub.f32 %v281_v46, %v290_v51  ;;  %295 = vadd.xlane.f32.xlu0 %v293_v52 }
 0x275   :  { %v294_v54 = vmul.f32 %v292_v53, %v292_v53 }
 0x277   :  { %297 = vadd.xlane.f32.xlu1 %v294_v54 }
 0x300   :  { %v296_v55 = vpop.xlane.xlu0 %295 }
 0x301   :  { %v299_v56 = vmul.f32 0.0078125, %v296_v55 }
 0x303   :  { %v301_v57 = vadd.f32 1e-05, %v299_v56 }
 0x304   :  { %v298_v58 = vpop.xlane.xlu1 %297 }
 0x305   :  { %421 = vrsqrt.f32 %v301_v57  ;;  %v300_v59 = vmul.f32 0.0078125, %v298_v58 }
 0x307   :  { %v302_v60 = vadd.f32 1e-05, %v300_v59 }
 0x309   :  { %423 = vrsqrt.f32 %v302_v60 }
 0x30f   :  { %v422_v61 = vpop.eup %421 }
 0x310   :  { %v305_v63 = vmul.f32 %v422_v61, %v291_v49 }
 0x312   :  { %v314_v1 = vmul.f32 %v365_v62, %v305_v63 }
 0x313   :  { %v424_v2 = vpop.eup %423 }
 0x314   :  { %v306_v3 = vmul.f32 %v424_v2, %v292_v53  ;;  %v323_v4 = vadd.f32 %v366_v0, %v314_v1 }
 0x316   :  { %v315_v5 = vmul.f32 %v365_v62, %v306_v3  ;;  %v325_v6 = vmax.f32 %v323_v4, 0.0 }
 0x318   :  { %v324_v7 = vadd.f32 %v366_v0, %v315_v5  ;;  %327 = vst [vmem:[#allocation11] sm:$0xff] %v325_v6 }
 0x31a   :  { %v326_v8 = vmax.f32 %v324_v7, 0.0 }
 0x31c   :  { %328 = vst [vmem:[#allocation11 + $0x8] sm:$0xff] %v326_v8 }
 0x31d   :  { %546 = shalt.err (!%p543_p2)
}
 0x31e   :  { %s547_s8 = scalar_lea.hbm %s684_s5, 256 }
 0x31f   :  { %p548_p3 = scmp.ne.s32.totalorder %s684_s5, %s547_s8  ;;  %p551_p4 = scmp.lt.u32.totalorder %s547_s8, %s684_s5 }
 0x321   :  { %p553_p5 = pnand %p551_p4, %p548_p3 }
 0x323   :  { %556 = shalt.err (!%p553_p5)
}
 0x324   :  { %s575_s14 = smov 128   ;;  %s576_s15 = smov 8  }
 0x325   :  { %340 = dma.vmem_to_hbm [thread:$0]  %s335_s29, 256, %s684_s5, [#allocation4], %s575_s14, %s575_s14, %s576_s15  }
 0x326   :  { %563 = dma.done.wait [#allocation4], 256  }
 0x327   :  { %564 = vsyncadd [#allocation4], 4294967040 }
 0x328   :  { %344 = vsyncpa [#allocation3], 1 }
 0x329   :  { %345 = vsyncpa [#allocation6], 1 }
 0x32a   :  { %346 = vsyncpa [#allocation9], 1 }
 0x32b   :  { %347 = vsyncpa [#allocation4], 1 }

// kernel: tpu_custom_call.1
= control target key start
LH: loop header
LB: loop body
LE: loop exit
PB: predicated region body
PF: predicated region fallthrough
CT: control target
= control target key end

     0   :  { %10 = vsyncpa [#allocation3], 0  ;;  %s679_s0 = inlined_call_operand.hbm [shape: f32[16,256], index: 0, kind: input, shape index: {}]   ;;  %s680_s1 = inlined_call_operand.hbm [shape: bf16[256,128], index: 1, kind: input, shape index: {}]   ;;  %s681_s2 = inlined_call_operand.hbm [shape: f32[1,128], index: 2, kind: input, shape index: {}]   ;;  %s682_s3 = inlined_call_operand.hbm [shape: f32[1,128], index: 3, kind: input, shape index: {}]   ;;  %s683_s4 = inlined_call_operand.hbm [shape: f32[1,128], index: 4, kind: input, shape index: {}]   ;;  %s684_s5 = inlined_call_operand.hbm [shape: f32[16,128], index: 5, kind: output, shape index: {}]  }
   0x1   :  { %11 = vsyncpa [#allocation6], 0 }
   0x2   :  { %12 = vsyncpa [#allocation9], 0 }
   0x3   :  { %13 = vsyncpa [#allocation4], 0  ;;  %s565_s18 = smov [#allocation5]   ;;  %s425_s22 = scalar_lea.hbm %s680_s1, 2048 }
   0x4   :  { %s31_s19 = sshll.u32 %s565_s18, 4  ;;  %p426_p0 = scmp.ne.s32.totalorder %s680_s1, %s425_s22  ;;  %s32_s19 = int_to_ptr.vmem [resolvable:$true] %s31_s19 }
   0x5   :  { %p429_p1 = scmp.lt.u32.totalorder %s425_s22, %s680_s1 }
   0x7   :  { %p431_p2 = pnand %p429_p1, %p426_p0 }
   0x9   :  { %434 = shalt.err (!%p431_p2)
}
   0xa   :  { %s435_s27 = scalar_lea.vmem %s32_s19, 2048  ;;  %p440_p4 = scmp.lt.s32.totalorder %s32_s19, %s32_s19 }
   0xb   :  { %p436_p3 = scmp.ne.s32.totalorder %s32_s19, %s435_s27  ;;  %p441_p5 = scmp.lt.s32.totalorder %s435_s27, %s435_s27 }
   0xd   :  { %p442_p6 = por %p441_p5, %p440_p4 }
   0xf   :  { %p443_p7 = pnand %p442_p6, %p436_p3 }
  0x11   :  { %446 = shalt.err (!%p443_p7)
}
  0x12   :  { %s566_s28 = smov 64   ;;  %s567_s29 = smov 4  }
  0x13   :  { %37 = dma.hbm_to_vmem [thread:$0]  %s680_s1, 2048, %s32_s19, [#allocation6], %s566_s28, %s566_s28, %s567_s29  }
  0x14   :  { %s568_s7 = smov [#allocation8]   ;;  %s569_s9 = smov [#allocation2]  }
  0x15   :  { %s54_s8 = sshll.u32 %s568_s7, 4  ;;  %s19_s10 = sshll.u32 %s569_s9, 4  ;;  %s55_s8 = int_to_ptr.vmem [resolvable:$true] %s54_s8  ;;  %s20_s10 = int_to_ptr.vmem [resolvable:$true] %s19_s10 }
  0x16   :  { %s447_s13 = scalar_lea.hbm %s682_s3, 16 }
  0x17   :  { %p448_p8 = scmp.ne.s32.totalorder %s682_s3, %s447_s13  ;;  %p451_p9 = scmp.lt.u32.totalorder %s447_s13, %s682_s3 }
  0x19   :  { %p453_p10 = pnand %p451_p9, %p448_p8 }
  0x1b   :  { %456 = shalt.err (!%p453_p10)
}
  0x1c   :  { %s457_s1 = scalar_lea.vmem %s55_s8, 16  ;;  %s461_s18 = scalar_lea.vmem %s55_s8, 32 }
  0x1d   :  { %p458_p11 = scmp.ne.s32.totalorder %s55_s8, %s457_s1  ;;  %p462_p12 = scmp.lt.s32.totalorder %s55_s8, %s55_s8 }
  0x1e   :  { %p463_p13 = scmp.lt.s32.totalorder %s461_s18, %s457_s1 }
  0x20   :  { %p464_p0 = por %p463_p13, %p462_p12 }
  0x22   :  { %p465_p1 = pnand %p464_p0, %p458_p11 }
  0x24   :  { %468 = shalt.err (!%p465_p1)
}
  0x25   :  { %57 = dma.hbm_to_vmem [thread:$0]  %s682_s3, 16, %s55_s8, [#allocation9]  }
  0x26   :  { %s469_s23 = scalar_lea.hbm %s679_s0, 512 }
  0x27   :  { %p470_p2 = scmp.ne.s32.totalorder %s679_s0, %s469_s23  ;;  %p473_p3 = scmp.lt.u32.totalorder %s469_s23, %s679_s0 }
  0x29   :  { %p475_p4 = pnand %p473_p3, %p470_p2 }
  0x2b   :  { %478 = shalt.err (!%p475_p4)
}
  0x2c   :  { %s479_s28 = scalar_lea.vmem %s20_s10, 512  ;;  %p484_p6 = scmp.lt.s32.totalorder %s20_s10, %s20_s10 }
  0x2d   :  { %p480_p5 = scmp.ne.s32.totalorder %s20_s10, %s479_s28  ;;  %p485_p7 = scmp.lt.s32.totalorder %s479_s28, %s479_s28 }
  0x2f   :  { %p486_p8 = por %p485_p7, %p484_p6 }
  0x31   :  { %p487_p9 = pnand %p486_p8, %p480_p5 }
  0x33   :  { %490 = shalt.err (!%p487_p9)
}
  0x34   :  { %s570_s3 = smov 256   ;;  %s571_s29 = smov 16  }
  0x35   :  { %25 = dma.hbm_to_vmem [thread:$0]  %s679_s0, 512, %s20_s10, [#allocation3], %s570_s3, %s570_s3, %s571_s29  }
  0x36   :  { %s572_s7 = smov [#allocation7]   ;;  %s573_s9 = smov [#allocation10]  }
  0x37   :  { %s44_s8 = sshll.u32 %s572_s7, 4  ;;  %s64_s11 = sshll.u32 %s573_s9, 4  ;;  %s45_s8 = int_to_ptr.vmem [resolvable:$true] %s44_s8  ;;  %s65_s11 = int_to_ptr.vmem [resolvable:$true] %s64_s11 }
  0x38   :  { %s491_s14 = scalar_lea.hbm %s681_s2, 16 }
  0x39   :  { %p492_p10 = scmp.ne.s32.totalorder %s681_s2, %s491_s14  ;;  %p495_p11 = scmp.lt.u32.totalorder %s491_s14, %s681_s2 }
  0x3b   :  { %p497_p12 = pnand %p495_p11, %p492_p10 }
  0x3d   :  { %500 = shalt.err (!%p497_p12)
}
  0x3e   :  { %s501_s0 = scalar_lea.vmem %s45_s8, 16  ;;  %s505_s10 = scalar_lea.vmem %s45_s8, 32 }
  0x3f   :  { %p502_p13 = scmp.ne.s32.totalorder %s45_s8, %s501_s0  ;;  %p506_p0 = scmp.lt.s32.totalorder %s45_s8, %s45_s8 }
  0x40   :  { %p507_p1 = scmp.lt.s32.totalorder %s505_s10, %s501_s0 }
  0x42   :  { %p508_p2 = por %p507_p1, %p506_p0 }
  0x44   :  { %p509_p3 = pnand %p508_p2, %p502_p13 }
  0x46   :  { %512 = shalt.err (!%p509_p3)
}
  0x47   :  { %47 = dma.hbm_to_vmem [thread:$0]  %s681_s2, 16, %s45_s8, [#allocation6]  }
  0x48   :  { %s513_s22 = scalar_lea.hbm %s683_s4, 16 }
  0x49   :  { %p514_p4 = scmp.ne.s32.totalorder %s683_s4, %s513_s22  ;;  %p517_p5 = scmp.lt.u32.totalorder %s513_s22, %s683_s4 }
  0x4b   :  { %p519_p6 = pnand %p517_p5, %p514_p4 }
  0x4d   :  { %522 = shalt.err (!%p519_p6)
}
  0x4e   :  { %s523_s27 = scalar_lea.vmem %s65_s11, 16  ;;  %s527_s28 = scalar_lea.vmem %s65_s11, 32 }
  0x4f   :  { %p524_p7 = scmp.ne.s32.totalorder %s65_s11, %s523_s27  ;;  %p528_p8 = scmp.lt.s32.totalorder %s65_s11, %s65_s11 }
  0x50   :  { %p529_p9 = scmp.lt.s32.totalorder %s527_s28, %s523_s27 }
  0x52   :  { %p530_p10 = por %p529_p9, %p528_p8 }
  0x54   :  { %p531_p11 = pnand %p530_p10, %p524_p7 }
  0x56   :  { %534 = shalt.err (!%p531_p11)
}
  0x57   :  { %67 = dma.hbm_to_vmem [thread:$0]  %s683_s4, 16, %s65_s11, [#allocation9]  }
  0x58   :  { %557 = dma.done.wait [#allocation3], 512  }
  0x59   :  { %558 = vsyncadd [#allocation3], 4294966784 }
  0x5a   :  { %559 = dma.done.wait [#allocation6], 2064  }
  0x5b   :  { %560 = vsyncadd [#allocation6], 4294965232 }
  0x5c   :  { %561 = dma.done.wait [#allocation9], 32  }
  0x5d   :  { %562 = vsyncadd [#allocation9], 4294967264  ;;  %v84_v0 = vld [vmem:[#allocation2] sm:$0xff]  ;;  %v85_v1 = vld [vmem:[#allocation2 + $0x8] sm:$0xff]  ;;  %s574_s4 = smov [#allocation11]  }
  0x5e   :  { %v86_v2 = vld [vmem:[#allocation2 + $0x10] sm:$0xff]  ;;  %v88_v3 = vmul.f32 %v84_v0, %v84_v0  ;;  %v89_v4 = vmul.f32 %v85_v1, %v85_v1  ;;  %v87_v5 = vld [vmem:[#allocation2 + $0x18] sm:$0xff]  ;;  %v401_v8 = vld [vmem:[#allocation5 + $0x40] sm:$0xff]   ;;  %s334_s29 = sshll.u32 %s574_s4, 4  ;;  %s335_s29 = int_to_ptr.vmem [resolvable:$true] %s334_s29 }
  0x5f   :  { %v90_v6 = vmul.f32 %v86_v2, %v86_v2  ;;  %v91_v7 = vmul.f32 %v87_v5, %v87_v5  ;;  %v402_v10 = vld [vmem:[#allocation5] sm:$0xff]   ;;  %367 = vmatprep.subr.bf16.mxu0 %v401_v8  ;;  %v403_v11 = vld [vmem:[#allocation5 + $0x48] sm:$0xff]   ;;  %v405_v14 = vld [vmem:[#allocation5 + $0x50] sm:$0xff]   ;;  %s535_s30 = scalar_lea.vmem %s335_s29, 256  ;;  %p540_p13 = scmp.lt.s32.totalorder %s335_s29, %s335_s29 }
  0x60   :  { %v92_v9 = vadd.f32 %v89_v4, %v88_v3  ;;  %368 = vmatpush3.bf16.msra.mxu0 %v402_v10  ;;  %v404_v13 = vld [vmem:[#allocation5 + $0x8] sm:$0xff]   ;;  %v406_v15 = vld [vmem:[#allocation5 + $0x10] sm:$0xff]   ;;  %v407_v16 = vld [vmem:[#allocation5 + $0x58] sm:$0xff]   ;;  %p536_p12 = scmp.ne.s32.totalorder %s335_s29, %s535_s30  ;;  %p541_p0 = scmp.lt.s32.totalorder %s535_s30, %s535_s30 }
  0x61   :  { %v95_v12 = vadd.f32 %v91_v7, %v90_v6  ;;  %369 = vmatprep.subr.bf16.mxu0 %v403_v11  ;;  %v408_v17 = vld [vmem:[#allocation5 + $0x18] sm:$0xff]   ;;  %v409_v18 = vld [vmem:[#allocation5 + $0x60] sm:$0xff]   ;;  %v411_v20 = vld [vmem:[#allocation5 + $0x68] sm:$0xff]  }
  0x62   :  { %93 = vadd.xlane.f32.xlu0 %v92_v9  ;;  %v410_v19 = vld [vmem:[#allocation5 + $0x20] sm:$0xff]   ;;  %v412_v21 = vld [vmem:[#allocation5 + $0x28] sm:$0xff]   ;;  %v413_v22 = vld [vmem:[#allocation5 + $0x70] sm:$0xff]   ;;  %p542_p1 = por %p541_p0, %p540_p13 }
  0x63   :  { %v414_v23 = vld [vmem:[#allocation5 + $0x30] sm:$0xff]   ;;  %v415_v24 = vld [vmem:[#allocation5 + $0x78] sm:$0xff]   ;;  %v348_v40 = vld [vmem:[#allocation7] ss:$0 sm:$0xff] }
  0x64   :  { %370 = vmatpush3.bf16.msra.mxu0 %v404_v13  ;;  %v416_v25 = vld [vmem:[#allocation5 + $0x38] sm:$0xff]   ;;  %v365_v62 = vld [vmem:[#allocation8] ss:$0 sm:$0xff]  ;;  %p543_p2 = pnand %p542_p1, %p536_p12 }
  0x65   :  { %371 = vmatprep.subr.bf16.mxu0 %v405_v14 }
  0x66   :  { %96 = vadd.xlane.f32.xlu0 %v95_v12 }
  0x68   :  { %372 = vmatpush3.bf16.msra.mxu0 %v406_v15 }
  0x69   :  { %373 = vmatprep.subr.bf16.mxu0 %v407_v16 }
  0x6c   :  { %374 = vmatpush3.bf16.msra.mxu0 %v408_v17 }
  0x6d   :  { %375 = vmatprep.subr.bf16.mxu0 %v409_v18 }
  0x70   :  { %376 = vmatpush3.bf16.msra.mxu0 %v410_v19 }
  0x71   :  { %377 = vmatprep.subr.bf16.mxu0 %v411_v20 }
  0x74   :  { %378 = vmatpush3.bf16.msra.mxu0 %v412_v21 }
  0x75   :  { %379 = vmatprep.subr.bf16.mxu0 %v413_v22 }
  0x78   :  { %380 = vmatpush3.bf16.msra.mxu0 %v414_v23 }
  0x79   :  { %381 = vmatprep.subr.bf16.mxu0 %v415_v24 }
  0x7c   :  { %382 = vmatpush3.bf16.msra.mxu0 %v416_v25 }
  0xef   :  { %v94_v26 = vpop.xlane.xlu0 %93 }
  0xf0   :  { %v98_v27 = vmax.f32 %v94_v26, 1e-24 }
  0xf2   :  { %417 = vrsqrt.f32 %v98_v27 }
  0xf3   :  { %v97_v28 = vpop.xlane.xlu0 %96 }
  0xf4   :  { %v99_v29 = vmax.f32 %v97_v28, 1e-24 }
  0xf6   :  { %419 = vrsqrt.f32 %v99_v29 }
  0xfc   :  { %v418_v30 = vpop.eup %417 }
  0xfd   :  { %v103_v32 = vmul.f32 %v418_v30, %v85_v1  ;;  %v102_v34 = vmul.f32 %v418_v30, %v84_v0  ;;  %v366_v0 = vld [vmem:[#allocation10] ss:$0 sm:$0xff] }
 0x100   :  { %v420_v31 = vpop.eup %419 }
 0x101   :  { %v105_v33 = vmul.f32 %v420_v31, %v87_v5  ;;  %v104_v35 = vmul.f32 %v420_v31, %v86_v2 }
 0x103   :  { %v107_v36 = vpack.c.bf16 %v105_v33, %v103_v32  ;;  %v106_v37 = vpack.c.bf16 %v104_v35, %v102_v34 }
 0x105   :  { %275 = vmatprep.mubr.bf16.mxu0 %v107_v36 }
 0x106   :  { %276 = vmatmul.mubr.bf16.vlgmr.msra.gmra.mrb[0].mxu0 %v106_v37 }
 0x1d9   :  { %v383_v38 = vpop.f32.mrb[0].mxu0 }
 0x1da   :  { %v384_v39 = vpop.f32.mrb[1].mxu0 }
 0x1db   :  { %v385_v41 = vadd.f32 %v384_v39, %v383_v38  ;;  %v386_v42 = vpop.f32.mrb[2].mxu0 }
 0x1dc   :  { %v387_v43 = vpop.f32.mrb[3].mxu0 }
 0x1dd   :  { %v388_v44 = vadd.f32 %v387_v43, %v386_v42  ;;  %v278_v45 = vadd.f32 %v385_v41, %v348_v40 }
 0x1df   :  { %284 = vadd.xlane.f32.xlu1 %v278_v45  ;;  %v281_v46 = vadd.f32 %v388_v44, %v348_v40 }
 0x1e3   :  { %286 = vadd.xlane.f32.xlu1 %v281_v46 }
 0x26c   :  { %v285_v47 = vpop.xlane.xlu1 %284 }
 0x26d   :  { %v289_v48 = vmul.f32 0.0078125, %v285_v47 }
 0x26f   :  { %v291_v49 = vsub.f32 %v278_v45, %v289_v48 }
 0x270   :  { %v287_v50 = vpop.xlane.xlu1 %286 }
 0x271   :  { %v290_v51 = vmul.f32 0.0078125, %v287_v50  ;;  %v293_v52 = vmul.f32 %v291_v49, %v291_v49 }
 0x273   :  { %v292_v53 = vsub.f32 %v281_v46, %v290_v51  ;;  %295 = vadd.xlane.f32.xlu0 %v293_v52 }
 0x275   :  { %v294_v54 = vmul.f32 %v292_v53, %v292_v53 }
 0x277   :  { %297 = vadd.xlane.f32.xlu1 %v294_v54 }
 0x300   :  { %v296_v55 = vpop.xlane.xlu0 %295 }
 0x301   :  { %v299_v56 = vmul.f32 0.0078125, %v296_v55 }
 0x303   :  { %v301_v57 = vadd.f32 1e-05, %v299_v56 }
 0x304   :  { %v298_v58 = vpop.xlane.xlu1 %297 }
 0x305   :  { %421 = vrsqrt.f32 %v301_v57  ;;  %v300_v59 = vmul.f32 0.0078125, %v298_v58 }
 0x307   :  { %v302_v60 = vadd.f32 1e-05, %v300_v59 }
 0x309   :  { %423 = vrsqrt.f32 %v302_v60 }
 0x30f   :  { %v422_v61 = vpop.eup %421 }
 0x310   :  { %v305_v63 = vmul.f32 %v422_v61, %v291_v49 }
 0x312   :  { %v314_v1 = vmul.f32 %v365_v62, %v305_v63 }
 0x313   :  { %v424_v2 = vpop.eup %423 }
 0x314   :  { %v306_v3 = vmul.f32 %v424_v2, %v292_v53  ;;  %v323_v4 = vadd.f32 %v366_v0, %v314_v1 }
 0x316   :  { %v315_v5 = vmul.f32 %v365_v62, %v306_v3  ;;  %v325_v6 = vmax.f32 %v323_v4, 0.0 }
 0x318   :  { %v324_v7 = vadd.f32 %v366_v0, %v315_v5  ;;  %327 = vst [vmem:[#allocation11] sm:$0xff] %v325_v6 }
 0x31a   :  { %v326_v8 = vmax.f32 %v324_v7, 0.0 }
 0x31c   :  { %328 = vst [vmem:[#allocation11 + $0x8] sm:$0xff] %v326_v8 }
 0x31d   :  { %546 = shalt.err (!%p543_p2)
}
 0x31e   :  { %s547_s8 = scalar_lea.hbm %s684_s5, 256 }
 0x31f   :  { %p548_p3 = scmp.ne.s32.totalorder %s684_s5, %s547_s8  ;;  %p551_p4 = scmp.lt.u32.totalorder %s547_s8, %s684_s5 }
 0x321   :  { %p553_p5 = pnand %p551_p4, %p548_p3 }
 0x323   :  { %556 = shalt.err (!%p553_p5)
}
 0x324   :  { %s575_s14 = smov 128   ;;  %s576_s15 = smov 8  }
 0x325   :  { %340 = dma.vmem_to_hbm [thread:$0]  %s335_s29, 256, %s684_s5, [#allocation4], %s575_s14, %s575_s14, %s576_s15  }
 0x326   :  { %563 = dma.done.wait [#allocation4], 256  }
 0x327   :  { %564 = vsyncadd [#allocation4], 4294967040 }
 0x328   :  { %344 = vsyncpa [#allocation3], 1 }
 0x329   :  { %345 = vsyncpa [#allocation6], 1 }
 0x32a   :  { %346 = vsyncpa [#allocation9], 1 }
 0x32b   :  { %347 = vsyncpa [#allocation4], 1 }

</bundles_post_ra>
